<compile_context>
chip_gen: v6e
topology: v6e:2x2x1
jax: 0.10.0
libtpu: 0.0.40
codegen_flags: <defaults>
</compile_context>

<pallas_src>
import functools

import jax
import jax.numpy as jnp
import numpy as np
from jax.experimental import pallas as pl
from jax.experimental.pallas import tpu as pltpu


def _round_up(n, m):
    return ((n + m - 1) // m) * m


def _maybe_buffered_spec(block_shape, index_map, buffers):
    """BlockSpec with an explicit buffer count; falls back if unsupported."""
    if hasattr(pl, "Buffered"):
        try:
            return pl.BlockSpec(block_shape, index_map,
                                pipeline_mode=pl.Buffered(buffers))
        except TypeError:
            pass
    return pl.BlockSpec(block_shape, index_map)


def _pcb_head_kernel(x_ref, w_red_ref, w_red_g_ref, shift_ref, w_cls_ref,
                     bias_ref, feat_ref, score_ref, zs_sc, gsum_sc, *, parts):
    """Grid = (batch tiles, parts).

    Every step: pool part p of this batch tile (AdaptiveAvgPool2d uniform bin),
    accumulate the global-pool running sum, and run branch p's BNNeck3
    reduction matmul with the streamed (BN-folded, bf16) weights.
    Last part step: global-branch reduction + all classifier matmuls + stores.
    """
    p = pl.program_id(1)

    # AdaptiveAvgPool2d((parts, 1)), uniform bins: mean over this part's
    # seg_len spatial rows.  Accumulate in f32 regardless of input dtype.
    seg = x_ref[...].astype(jnp.float32)                 # (bt, seg_len, C)
    pooled = jnp.mean(seg, axis=1)                       # (bt, C)

    @pl.when(p == 0)
    def _():
        gsum_sc[...] = jnp.zeros_like(gsum_sc)
    gsum_sc[...] = gsum_sc[...] + pooled

    # BNNeck3.reduction (1x1 conv, no bias) for branch p; the eval-BN scale is
    # already folded into the bf16 weights, accumulation stays f32 on the MXU.
    zs_sc[p] = jnp.dot(pooled.astype(w_red_ref.dtype), w_red_ref[...],
                       preferred_element_type=jnp.float32)

    @pl.when(p == parts - 1)
    def _():
        # Global (1x1) pool == mean of the uniform part pools.
        gpool = gsum_sc[...] * (1.0 / parts)             # (bt, C)
        zs_sc[parts] = jnp.dot(gpool.astype(w_red_g_ref.dtype), w_red_g_ref[...],
                               preferred_element_type=jnp.float32)

        zs = zs_sc[...]                                  # (P+1, bt, F_pad) f32
        # after_neck = zs + bn_shift (eval-mode BatchNorm1d, already folded).
        feat_ref[...] = (zs + shift_ref[...]).astype(feat_ref.dtype)

        # BNNeck3.classifier (bias-free Linear) for every branch at once; the
        # bn_shift contribution is a precomputed per-branch f32 bias.
        score = jnp.einsum("pbf,pfn->pbn", zs.astype(w_cls_ref.dtype),
                           w_cls_ref[...], preferred_element_type=jnp.float32)
        score_ref[...] = (score + bias_ref[...]).astype(score_ref.dtype)


def pcb_head_forward(x_nhwc, params, parts):
    """Eval-mode PCB head on an NHWC backbone (layer4) feature map.

    The backbone should emit NHWC so no layout transpose touches the large
    feature map (the (B, parts, seg_len, C) view is a free reshape).  A bf16
    feature map halves the HBM stream; accumulation in the kernel is f32.

    Returns
      eval_out: (B, feats, parts+1)        == torch.stack(after_neck + [global], dim=2)
      scores  : (B, num_classes, parts+1)  (the training-mode per-branch scores)
    """
    B, H, W, C = x_nhwc.shape
    # TODO(synk): non-uniform AdaptiveAvgPool2d bins (H % parts != 0) not handled.
    assert H % parts == 0, "non-uniform AdaptiveAvgPool2d bins not supported"

    n_branch = parts + 1
    F = params["w_red"].shape[-1]
    NC = params["w_cls"].shape[-1]
    F_pad = _round_up(F, 128)
    NC_pad = _round_up(NC, 128)
    seg_len = (H // parts) * W

    # NHWC -> (B, parts, seg_len, C): pure metadata reshape, channels lane-dense.
    x = x_nhwc.reshape(B, parts, seg_len, C)

    # Batch tiling: >=2 tiles feeds both v7x TensorCores and deepens the very
    # shallow pipeline; tiles must be sublane-aligned (multiple of 8).
    bt = B // 2 if (B % 16 == 0) else B
    nb = B // bt

    # Fold BatchNorm1d eval statistics into the reduction weights / biases
    # (tiny glue math, not the hot path).
    eps = 1e-5
    f32 = jnp.float32
    scale = params["bn_gamma"].astype(f32) / jnp.sqrt(params["bn_var"].astype(f32) + eps)
    shift = params["bn_beta"].astype(f32) - params["bn_mean"].astype(f32) * scale
    w_red_s = params["w_red"].astype(f32) * scale[:, None, :]                  # (P+1, C, F)
    bias_cls = jnp.einsum("pf,pfn->pn", shift, params["w_cls"].astype(f32))    # (P+1, NC)

    # Lane-dense (multiple-of-128) last dims; bf16 matmul operands (MXU native).
    w_red_p = jnp.pad(w_red_s, ((0, 0), (0, 0), (0, F_pad - F))).astype(jnp.bfloat16)
    w_red_parts = w_red_p[:parts]                                              # (P,   C, F_pad)
    w_red_glob = w_red_p[parts:]                                               # (1,   C, F_pad)
    w_cls_p = jnp.pad(params["w_cls"].astype(f32),
                      ((0, 0), (0, F_pad - F), (0, NC_pad - NC))).astype(jnp.bfloat16)
    shift_p = jnp.pad(shift, ((0, 0), (0, F_pad - F)))[:, None, :]             # (P+1, 1, F_pad) f32
    bias_p = jnp.pad(bias_cls, ((0, 0), (0, NC_pad - NC)))[:, None, :]         # (P+1, 1, NC_pad) f32

    # VMEM accounting (double-buffered streamed blocks, single-buffered consts).
    seg_blk = bt * seg_len * C * x.dtype.itemsize
    wred_blk = C * F_pad * w_red_p.dtype.itemsize
    const_bytes = (w_red_glob.size * w_red_glob.dtype.itemsize
                   + w_cls_p.size * w_cls_p.dtype.itemsize
                   + shift_p.size * 4 + bias_p.size * 4)
    out_blk = n_branch * bt * (F_pad + NC_pad) * 4
    scratch_bytes = (n_branch * bt * F_pad + bt * C) * 4
    vmem_need = 2 * seg_blk + 2 * wred_blk + const_bytes + 2 * out_blk + scratch_bytes
    try:
        vmem_cap = int(pltpu.get_tpu_info().vmem_capacity_bytes) * 3 // 4
    except Exception:
        vmem_cap = 48 << 20   # v7x-safe (64 MiB physical per TensorCore)
    vmem_limit = int(min(max(int(vmem_need * 1.25) + (4 << 20), 16 << 20), vmem_cap))

    flops = int(B * parts * seg_len * C                     # pooling
                + 2 * n_branch * B * C * F_pad              # reduction matmuls
                + 2 * n_branch * B * F_pad * NC_pad)        # classifier matmuls
    bytes_accessed = int(x.size * x.dtype.itemsize
                         + nb * parts * wred_blk + const_bytes
                         + n_branch * B * (F_pad + NC_pad) * 4)

    kernel = functools.partial(_pcb_head_kernel, parts=parts)

    in_specs = [
        # One (bt, seg_len, C) part segment per grid step (tile, not whole map).
        pl.BlockSpec((bt, pl.Squeezed(), seg_len, C), lambda b, p: (b, p, 0, 0)),
        # Reduction weights streamed one branch per step.
        pl.BlockSpec((pl.Squeezed(), C, F_pad), lambda b, p: (p, 0, 0)),
        # Constant-index per-branch constants: single-buffered (VMEM saving).
        _maybe_buffered_spec((pl.Squeezed(), C, F_pad), lambda b, p: (0, 0, 0), 1),
        _maybe_buffered_spec((n_branch, 1, F_pad), lambda b, p: (0, 0, 0), 1),
        _maybe_buffered_spec((n_branch, F_pad, NC_pad), lambda b, p: (0, 0, 0), 1),
        _maybe_buffered_spec((n_branch, 1, NC_pad), lambda b, p: (0, 0, 0), 1),
    ]
    out_specs = (pl.BlockSpec((n_branch, bt, F_pad), lambda b, p: (0, b, 0)),
                 pl.BlockSpec((n_branch, bt, NC_pad), lambda b, p: (0, b, 0)))

    feat, score = pl.pallas_call(
        kernel,
        out_shape=(jax.ShapeDtypeStruct((n_branch, B, F_pad), jnp.float32),
                   jax.ShapeDtypeStruct((n_branch, B, NC_pad), jnp.float32)),
        grid_spec=pltpu.PrefetchScalarGridSpec(
            num_scalar_prefetch=0,
            grid=(nb, parts),
            in_specs=in_specs,
            out_specs=out_specs,
            scratch_shapes=[pltpu.VMEM((n_branch, bt, F_pad), jnp.float32),
                            pltpu.VMEM((bt, C), jnp.float32)]),
        compiler_params=pltpu.CompilerParams(
            # Batch tiles are independent (megacore); part loop accumulates.
            dimension_semantics=("parallel", "arbitrary"),
            vmem_limit_bytes=vmem_limit),
        cost_estimate=pl.CostEstimate(flops=flops, transcendentals=0,
                                      bytes_accessed=bytes_accessed),
    )(x, w_red_parts, w_red_glob, shift_p, w_cls_p, bias_p)

    # torch eval return: torch.stack(after_neck + [feat_global_branch[0]], dim=2)
    eval_out = jnp.transpose(feat[:, :, :F], (1, 2, 0))      # (B, F, parts+1)
    scores = jnp.transpose(score[:, :, :NC], (1, 2, 0))      # (B, num_classes, parts+1)
    return eval_out, scores


def pcb_ref(x_nhwc, params, parts):
    """Pure-JAX f32 reference of the same head (for correctness check)."""
    B, H, W, C = x_nhwc.shape
    x = x_nhwc.astype(jnp.float32)
    part_pool = x.reshape(B, parts, (H // parts) * W, C).mean(axis=2)        # (B, P, C)
    global_pool = x.reshape(B, H * W, C).mean(axis=1)                        # (B, C)
    pooled = jnp.concatenate([jnp.transpose(part_pool, (1, 0, 2)),
                              global_pool[None]], axis=0)                    # (P+1, B, C)
    z = jnp.einsum("pbc,pcf->pbf", pooled, params["w_red"].astype(jnp.float32))
    scale = params["bn_gamma"] / jnp.sqrt(params["bn_var"] + 1e-5)
    shift = params["bn_beta"] - params["bn_mean"] * scale
    after = z * scale[:, None, :] + shift[:, None, :]
    score = jnp.einsum("pbf,pfn->pbn", after, params["w_cls"].astype(jnp.float32))
    return jnp.transpose(after, (1, 2, 0)), jnp.transpose(score, (1, 2, 0))


if __name__ == "__main__":
    # Small shapes consistent with the module's head (scaled down from 2048-d).
    B, C, H, W = 2, 256, 8, 4          # backbone layer4 feature map
    PARTS = 4                          # args.parts
    FEATS = 128                        # args.feats (BNNeck3 bottleneck dim)
    NUM_CLASSES = 32                   # args.num_classes

    key = jax.random.PRNGKey(0)
    kx, kw, kg, km, kv, kc = jax.random.split(key, 6)

    # The JAX backbone emits NHWC natively; streaming bf16 halves the kernel's
    # HBM traffic (in-kernel accumulation is f32).
    x_nhwc = jax.random.normal(kx, (B, H, W, C), dtype=jnp.float32).astype(jnp.bfloat16)

    n_branch = PARTS + 1
    params = {
        # BNNeck3.reduction: Conv2d(C, F, 1, bias=False) per branch, stored as (C, F).
        "w_red": 0.02 * jax.random.normal(kw, (n_branch, C, FEATS), dtype=jnp.float32),
        # BatchNorm1d(F) eval statistics / affine params per branch.
        "bn_gamma": 1.0 + 0.02 * jax.random.normal(kg, (n_branch, FEATS), dtype=jnp.float32),
        "bn_beta": jnp.zeros((n_branch, FEATS), dtype=jnp.float32),  # bias frozen in BNNeck3
        "bn_mean": 0.1 * jax.random.normal(km, (n_branch, FEATS), dtype=jnp.float32),
        "bn_var": 1.0 + 0.1 * jnp.abs(jax.random.normal(kv, (n_branch, FEATS), dtype=jnp.float32)),
        # BNNeck3.classifier: Linear(F, num_classes, bias=False), stored as (F, NC).
        "w_cls": 0.001 * jax.random.normal(kc, (n_branch, FEATS, NUM_CLASSES), dtype=jnp.float32),
    }

    out, scores = pcb_head_forward(x_nhwc, params, PARTS)
    jax.block_until_ready((out, scores))

    ref_out, ref_scores = pcb_ref(x_nhwc, params, PARTS)
    # bf16 matmul operands (MXU-native) + BN scale folded into the weights =>
    # slightly looser tolerance vs. the all-f32 reference.
    np.testing.assert_allclose(np.asarray(out), np.asarray(ref_out), rtol=2e-2, atol=5e-3)
    np.testing.assert_allclose(np.asarray(scores), np.asarray(ref_scores), rtol=2e-2, atol=5e-3)

    assert out.shape == (B, FEATS, PARTS + 1)
    assert scores.shape == (B, NUM_CLASSES, PARTS + 1)
    print("KERNEL_OK")
</pallas_src>

<mosaic_0001>
module attributes {stable_mosaic.version = 11 : i64} {
  func.func @_pcb_head_kernel(%arg0: i32, %arg1: i32, %arg2: memref<2x1x8x256xbf16, #tpu.memory_space<vmem>>, %arg3: memref<1x256x128xbf16, #tpu.memory_space<vmem>>, %arg4: memref<1x256x128xbf16, #tpu.memory_space<vmem>>, %arg5: memref<5x1x128xf32, #tpu.memory_space<vmem>>, %arg6: memref<5x128x128xbf16, #tpu.memory_space<vmem>>, %arg7: memref<5x1x128xf32, #tpu.memory_space<vmem>>, %arg8: memref<5x2x128xf32, #tpu.memory_space<vmem>>, %arg9: memref<5x2x128xf32, #tpu.memory_space<vmem>>, %arg10: memref<5x2x128xf32, #tpu.memory_space<vmem>>, %arg11: memref<2x256xf32, #tpu.memory_space<vmem>>) attributes {dimension_semantics = [#tpu.dimension_semantics<parallel>, #tpu.dimension_semantics<arbitrary>], iteration_bounds = array<i64: 1, 4>, scalar_prefetch = 0 : i64, scratch_operands = 2 : i64, tpu.core_type = #tpu.core_type<tc>, window_params = [{transform_indices = @transform_0, window_bounds = array<i64: 2, 1, 8, 256>}, {transform_indices = @transform_1, window_bounds = array<i64: 1, 256, 128>}, {pipeline_mode = #tpu.pipeline_mode<synchronous>, transform_indices = @transform_2, window_bounds = array<i64: 1, 256, 128>}, {pipeline_mode = #tpu.pipeline_mode<synchronous>, transform_indices = @transform_3, window_bounds = array<i64: 5, 1, 128>}, {pipeline_mode = #tpu.pipeline_mode<synchronous>, transform_indices = @transform_4, window_bounds = array<i64: 5, 128, 128>}, {pipeline_mode = #tpu.pipeline_mode<synchronous>, transform_indices = @transform_5, window_bounds = array<i64: 5, 1, 128>}, {transform_indices = @transform_6, window_bounds = array<i64: 5, 2, 128>}, {transform_indices = @transform_7, window_bounds = array<i64: 5, 2, 128>}]} {
    %c0 = arith.constant 0 : index
    %c0_0 = arith.constant 0 : index
    %c0_1 = arith.constant 0 : index
    %c0_2 = arith.constant 0 : index
    %0 = vector.load %arg2[%c0, %c0_0, %c0_1, %c0_2] : memref<2x1x8x256xbf16, #tpu.memory_space<vmem>>, vector<2x1x8x256xbf16>
    %1 = vector.shape_cast %0 : vector<2x1x8x256xbf16> to vector<2x8x256xbf16>
    %2 = arith.extf %1 : vector<2x8x256xbf16> to vector<2x8x256xf32>
    %cst = arith.constant dense<0.000000e+00> : vector<2x256xf32>
    %3 = vector.multi_reduction <add>, %2, %cst [1] : vector<2x8x256xf32> to vector<2x256xf32>
    %cst_3 = arith.constant 8.000000e+00 : f32
    %4 = vector.broadcast %cst_3 : f32 to vector<2x256xf32>
    %5 = arith.divf %3, %4 : vector<2x256xf32>
    %c0_i32 = arith.constant 0 : i32
    %6 = arith.cmpi eq, %arg1, %c0_i32 : i32
    %7 = arith.extui %6 : i1 to i32
    %c0_i32_4 = arith.constant 0 : i32
    %8 = arith.cmpi ne, %7, %c0_i32_4 : i32
    scf.if %8 {
      %cst_16 = arith.constant 0.000000e+00 : f32
      %23 = vector.broadcast %cst_16 : f32 to vector<2x256xf32>
      %c0_17 = arith.constant 0 : index
      %c0_18 = arith.constant 0 : index
      %24 = vector.load %arg11[%c0_17, %c0_18] : memref<2x256xf32, #tpu.memory_space<vmem>>, vector<2x256xf32>
      tpu.vector_store %arg11[%c0_17, %c0_18], %23 {strides = array<i32>} : memref<2x256xf32, #tpu.memory_space<vmem>>, vector<2x256xf32>,
    } else {
    }
    %c0_5 = arith.constant 0 : index
    %c0_6 = arith.constant 0 : index
    %9 = vector.load %arg11[%c0_5, %c0_6] : memref<2x256xf32, #tpu.memory_space<vmem>>, vector<2x256xf32>
    %10 = arith.addf %9, %5 : vector<2x256xf32>
    %c0_7 = arith.constant 0 : index
    %c0_8 = arith.constant 0 : index
    %11 = vector.load %arg11[%c0_7, %c0_8] : memref<2x256xf32, #tpu.memory_space<vmem>>, vector<2x256xf32>
    tpu.vector_store %arg11[%c0_7, %c0_8], %10 {strides = array<i32>} : memref<2x256xf32, #tpu.memory_space<vmem>>, vector<2x256xf32>,
    %12 = arith.truncf %5 : vector<2x256xf32> to vector<2x256xbf16>
    %c0_9 = arith.constant 0 : index
    %c0_10 = arith.constant 0 : index
    %c0_11 = arith.constant 0 : index
    %13 = vector.load %arg3[%c0_9, %c0_10, %c0_11] : memref<1x256x128xbf16, #tpu.memory_space<vmem>>, vector<1x256x128xbf16>
    %14 = vector.shape_cast %13 : vector<1x256x128xbf16> to vector<256x128xbf16>
    %cst_12 = arith.constant dense<0.000000e+00> : vector<2x128xf32>
    %15 = tpu.matmul %12, %14, %cst_12 {dimension_numbers = #tpu.dot_dimension_numbers<[1], [0], [0], [1], [0, 0, 1, 1], [], []>} : vector<2x256xbf16>, vector<256x128xbf16>, vector<2x128xf32> -> vector<2x128xf32>
    %16 = arith.index_cast %arg1 : i32 to index
    %c0_13 = arith.constant 0 : index
    %c0_14 = arith.constant 0 : index
    %17 = vector.load %arg10[%16, %c0_13, %c0_14] : memref<5x2x128xf32, #tpu.memory_space<vmem>>, vector<1x2x128xf32>
    %18 = vector.shape_cast %17 : vector<1x2x128xf32> to vector<2x128xf32>
    %19 = vector.shape_cast %15 : vector<2x128xf32> to vector<1x2x128xf32>
    tpu.vector_store %arg10[%16, %c0_13, %c0_14], %19 {strides = array<i32>} : memref<5x2x128xf32, #tpu.memory_space<vmem>>, vector<1x2x128xf32>,
    %c3_i32 = arith.constant 3 : i32
    %20 = arith.cmpi eq, %arg1, %c3_i32 : i32
    %21 = arith.extui %20 : i1 to i32
    %c0_i32_15 = arith.constant 0 : i32
    %22 = arith.cmpi ne, %21, %c0_i32_15 : i32
    scf.if %22 {
      %c0_16 = arith.constant 0 : index
      %c0_17 = arith.constant 0 : index
      %23 = vector.load %arg11[%c0_16, %c0_17] : memref<2x256xf32, #tpu.memory_space<vmem>>, vector<2x256xf32>
      %cst_18 = arith.constant 2.500000e-01 : f32
      %24 = vector.broadcast %cst_18 : f32 to vector<2x256xf32>
      %25 = arith.mulf %23, %24 : vector<2x256xf32>
      %26 = arith.truncf %25 : vector<2x256xf32> to vector<2x256xbf16>
      %c0_19 = arith.constant 0 : index
      %c0_20 = arith.constant 0 : index
      %c0_21 = arith.constant 0 : index
      %27 = vector.load %arg4[%c0_19, %c0_20, %c0_21] : memref<1x256x128xbf16, #tpu.memory_space<vmem>>, vector<1x256x128xbf16>
      %28 = vector.shape_cast %27 : vector<1x256x128xbf16> to vector<256x128xbf16>
      %cst_22 = arith.constant dense<0.000000e+00> : vector<2x128xf32>
      %29 = tpu.matmul %26, %28, %cst_22 {dimension_numbers = #tpu.dot_dimension_numbers<[1], [0], [0], [1], [0, 0, 1, 1], [], []>} : vector<2x256xbf16>, vector<256x128xbf16>, vector<2x128xf32> -> vector<2x128xf32>
      %c4 = arith.constant 4 : index
      %c0_23 = arith.constant 0 : index
      %c0_24 = arith.constant 0 : index
      %30 = vector.load %arg10[%c4, %c0_23, %c0_24] : memref<5x2x128xf32, #tpu.memory_space<vmem>>, vector<1x2x128xf32>
      %31 = vector.shape_cast %30 : vector<1x2x128xf32> to vector<2x128xf32>
      %32 = vector.shape_cast %29 : vector<2x128xf32> to vector<1x2x128xf32>
      tpu.vector_store %arg10[%c4, %c0_23, %c0_24], %32 {strides = array<i32>} : memref<5x2x128xf32, #tpu.memory_space<vmem>>, vector<1x2x128xf32>,
      %c0_25 = arith.constant 0 : index
      %c0_26 = arith.constant 0 : index
      %c0_27 = arith.constant 0 : index
      %33 = vector.load %arg10[%c0_25, %c0_26, %c0_27] : memref<5x2x128xf32, #tpu.memory_space<vmem>>, vector<5x2x128xf32>
      %c0_28 = arith.constant 0 : index
      %c0_29 = arith.constant 0 : index
      %c0_30 = arith.constant 0 : index
      %34 = vector.load %arg5[%c0_28, %c0_29, %c0_30] : memref<5x1x128xf32, #tpu.memory_space<vmem>>, vector<5x1x128xf32>
      %35 = vector.broadcast %34 : vector<5x1x128xf32> to vector<5x2x128xf32>
      %36 = arith.addf %33, %35 : vector<5x2x128xf32>
      %c0_31 = arith.constant 0 : index
      %c0_32 = arith.constant 0 : index
      %c0_33 = arith.constant 0 : index
      %37 = vector.load %arg8[%c0_31, %c0_32, %c0_33] : memref<5x2x128xf32, #tpu.memory_space<vmem>>, vector<5x2x128xf32>
      tpu.vector_store %arg8[%c0_31, %c0_32, %c0_33], %36 {strides = array<i32>} : memref<5x2x128xf32, #tpu.memory_space<vmem>>, vector<5x2x128xf32>,
      %38 = arith.truncf %33 : vector<5x2x128xf32> to vector<5x2x128xbf16>
      %c0_34 = arith.constant 0 : index
      %c0_35 = arith.constant 0 : index
      %c0_36 = arith.constant 0 : index
      %39 = vector.load %arg6[%c0_34, %c0_35, %c0_36] : memref<5x128x128xbf16, #tpu.memory_space<vmem>>, vector<5x128x128xbf16>
      "tpu.trace_start"() <{level = 10 : i32, message = "pbf,pfn->pbn"}> : () -> ()
      %cst_37 = arith.constant dense<0.000000e+00> : vector<5x2x128xf32>
      %40 = tpu.matmul %38, %39, %cst_37 {dimension_numbers = #tpu.dot_dimension_numbers<[2], [1], [1], [2], [0, 0, 0, 1, 1, 2], [0], [0]>} : vector<5x2x128xbf16>, vector<5x128x128xbf16>, vector<5x2x128xf32> -> vector<5x2x128xf32>
      "tpu.trace_stop"() : () -> ()
      %c0_38 = arith.constant 0 : index
      %c0_39 = arith.constant 0 : index
      %c0_40 = arith.constant 0 : index
      %41 = vector.load %arg7[%c0_38, %c0_39, %c0_40] : memref<5x1x128xf32, #tpu.memory_space<vmem>>, vector<5x1x128xf32>
      %42 = vector.broadcast %41 : vector<5x1x128xf32> to vector<5x2x128xf32>
      %43 = arith.addf %40, %42 : vector<5x2x128xf32>
      %c0_41 = arith.constant 0 : index
      %c0_42 = arith.constant 0 : index
      %c0_43 = arith.constant 0 : index
      %44 = vector.load %arg9[%c0_41, %c0_42, %c0_43] : memref<5x2x128xf32, #tpu.memory_space<vmem>>, vector<5x2x128xf32>
      tpu.vector_store %arg9[%c0_41, %c0_42, %c0_43], %43 {strides = array<i32>} : memref<5x2x128xf32, #tpu.memory_space<vmem>>, vector<5x2x128xf32>,
    } else {
    }
    return
  }
  func.func @transform_0(%arg0: i32, %arg1: i32) -> (i32, i32, i32, i32) {
    %c0_i32 = arith.constant 0 : i32
    %c0_i32_0 = arith.constant 0 : i32
    %c0_i32_1 = arith.constant 0 : i32
    return %arg0, %arg1, %c0_i32, %c0_i32_0 : i32, i32, i32, i32
  }
  func.func @transform_1(%arg0: i32, %arg1: i32) -> (i32, i32, i32) {
    %c0_i32 = arith.constant 0 : i32
    %c0_i32_0 = arith.constant 0 : i32
    %c0_i32_1 = arith.constant 0 : i32
    return %arg1, %c0_i32, %c0_i32_0 : i32, i32, i32
  }
  func.func @transform_2(%arg0: i32, %arg1: i32) -> (i32, i32, i32) {
    %c0_i32 = arith.constant 0 : i32
    %c0_i32_0 = arith.constant 0 : i32
    %c0_i32_1 = arith.constant 0 : i32
    %c0_i32_2 = arith.constant 0 : i32
    return %c0_i32, %c0_i32_0, %c0_i32_1 : i32, i32, i32
  }
  func.func @transform_3(%arg0: i32, %arg1: i32) -> (i32, i32, i32) {
    %c0_i32 = arith.constant 0 : i32
    %c0_i32_0 = arith.constant 0 : i32
    %c0_i32_1 = arith.constant 0 : i32
    %c0_i32_2 = arith.constant 0 : i32
    return %c0_i32, %c0_i32_0, %c0_i32_1 : i32, i32, i32
  }
  func.func @transform_4(%arg0: i32, %arg1: i32) -> (i32, i32, i32) {
    %c0_i32 = arith.constant 0 : i32
    %c0_i32_0 = arith.constant 0 : i32
    %c0_i32_1 = arith.constant 0 : i32
    %c0_i32_2 = arith.constant 0 : i32
    return %c0_i32, %c0_i32_0, %c0_i32_1 : i32, i32, i32
  }
  func.func @transform_5(%arg0: i32, %arg1: i32) -> (i32, i32, i32) {
    %c0_i32 = arith.constant 0 : i32
    %c0_i32_0 = arith.constant 0 : i32
    %c0_i32_1 = arith.constant 0 : i32
    %c0_i32_2 = arith.constant 0 : i32
    return %c0_i32, %c0_i32_0, %c0_i32_1 : i32, i32, i32
  }
  func.func @transform_6(%arg0: i32, %arg1: i32) -> (i32, i32, i32) {
    %c0_i32 = arith.constant 0 : i32
    %c0_i32_0 = arith.constant 0 : i32
    %c0_i32_1 = arith.constant 0 : i32
    return %c0_i32, %arg0, %c0_i32_0 : i32, i32, i32
  }
  func.func @transform_7(%arg0: i32, %arg1: i32) -> (i32, i32, i32) {
    %c0_i32 = arith.constant 0 : i32
    %c0_i32_0 = arith.constant 0 : i32
    %c0_i32_1 = arith.constant 0 : i32
    return %c0_i32, %arg0, %c0_i32_0 : i32, i32, i32
  }
}

</mosaic_0001>

<bundles_post_ra>
// kernel: tpu_custom_call.1
= control target key start
LH: loop header
LB: loop body
LE: loop exit
PB: predicated region body
PF: predicated region fallthrough
CT: control target
= control target key end

     0   :  { %s2720_s0 = inlined_call_operand.hbm [shape: bf16[2,4,8,256], index: 0, kind: input, shape index: {}]   ;;  %s2721_s1 = inlined_call_operand.hbm [shape: bf16[4,256,128], index: 1, kind: input, shape index: {}]   ;;  %s2722_s2 = inlined_call_operand.hbm [shape: bf16[1,256,128], index: 2, kind: input, shape index: {}]   ;;  %s2723_s3 = inlined_call_operand.vmem [shape: f32[5,1,128], index: 3, kind: input, shape index: {}]   ;;  %s2724_s4 = inlined_call_operand.hbm [shape: bf16[5,128,128], index: 4, kind: input, shape index: {}]   ;;  %s2725_s5 = inlined_call_operand.hbm [shape: f32[5,1,128], index: 5, kind: input, shape index: {}]   ;;  %s2726_s6 = inlined_call_operand.hbm [shape: f32[5,2,128], index: 6, kind: output, shape index: {0}]   ;;  %s2727_s7 = inlined_call_operand.hbm [shape: f32[5,2,128], index: 7, kind: output, shape index: {1}]  }
   0x1   :  { %2733 = sst [smem:[#allocation25_spill]] %s2720_s0 }
   0x2   :  { %2734 = sst [smem:[#allocation26_spill]] %s2722_s2 }
   0x3   :  { %2735 = sst [smem:[#allocation27_spill]] %s2724_s4 }
   0x4   :  { %2736 = sst [smem:[#allocation28_spill]] %s2725_s5 }
   0x5   :  { %13 = vsyncpa [#allocation5], 0 }
   0x6   :  { %15 = vsyncpa [#allocation5 + $0x1], 0 }
   0x7   :  { %16 = vsyncpa [#allocation8], 0 }
   0x8   :  { %18 = vsyncpa [#allocation8 + $0x1], 0 }
   0x9   :  { %19 = vsyncpa [#allocation11], 0 }
   0xa   :  { %20 = vsyncpa [#allocation6], 0 }
   0xb   :  { %21 = vsyncpa [#allocation15], 0  ;;  %s2426_s24 = smov 0   ;;  %s2428_s25 = smov 0  }
   0xc   :  { %s2430_s26 = smov 0   ;;  %s2432_s27 = smov 0  }
   0xd   :  { %s2434_s28 = smov 0   ;;  %s2436_s29 = smov 0  }
   0xe LB: > { %2737 = sst [smem:[#allocation22_spill]] %s2352_s26  ;;  %s2455_s30 = sadd.s32 4294967295, %s2364_s29   ;;  %s2364_s29 = sphi %s2436_s29, %s27_s29   ;;  %s2360_s28 = sphi %s2434_s28, %s2760_s28   ;;  %s2356_s27 = sphi %s2432_s27, %s2759_s27   ;;  %s2352_s26 = sphi %s2430_s26, %s2755_s26   ;;  %s2348_s25 = sphi %s2428_s25, %s2758_s25   ;;  %s2344_s24 = sphi %s2426_s24, %s2757_s24  }
   0xf   : > { %s48_s8 = sadd.s32 1, %s2352_s26  ;;  %p55_p0 = scmp.ne.s32.totalorder %s2352_s26, %s2348_s25 }
  0x10   : > { %p56_p1 = scmp.eq.s32.totalorder %s2364_s29, 0  ;;  %p61_p2 = scmp.ne.s32.totalorder %s2348_s25, %s2344_s24 }
  0x11   : > { %p2728_p3 = scmp.eq.s32.totalorder %s2455_s30, 0  ;;  %p1623_p5 = scmp.ge.s32.totalorder %s2364_s29, 1 }
  0x12   : > { %p57_p4 = por %p56_p1, %p55_p0  ;;  %p234_p7 = scmp.lt.s32.totalorder %s2364_s29, 5 }
  0x13   : > { %p2466_p6 = por %p2728_p3, %p61_p2  ;;  %s2366_s11 = smov [#allocation9]  }
  0x14   : > { %p2471_p8 = pnand %p1623_p5, %p234_p7  ;;  %s246_s12 = sshll.u32 %s2366_s11, 4  ;;  %s247_s12 = int_to_ptr.vmem [resolvable:$true] %s246_s12 }
  0x15   : > { %p1966_p10 = scmp.lt.s32.totalorder %s2364_s29, 4  ;;  %s2367_s15 = smov [#allocation10]  }
  0x16   : > { %p1946_p9 = pneg %p2471_p8  ;;  %s262_s16 = sshll.u32 %s2367_s15, 4  ;;  %s263_s16 = int_to_ptr.vmem [resolvable:$true] %s262_s16 }
  0x17   : > { %p2484_p12 = pnand %p1966_p10, %p57_p4  ;;  %s2123_s17 = scalar_lea.vmem %s247_s12, 2048 }
  0x18   : > { %p2480_p11 = pnand %p1946_p9, %p2728_p3  ;;  %p2124_p0 = scmp.ne.s32.totalorder %s247_s12, %s2123_s17 }
  0x19   : > { %p2131_p5 = scmp.lt.s32.totalorder %s247_s12, %s247_s12  ;;  %p2132_p7 = scmp.lt.s32.totalorder %s2123_s17, %s2123_s17 }
  0x1a   : > { %p2114_p13 = pneg %p2480_p11 }
  0x1b   : > { %p2133_p9 = por %p2132_p7, %p2131_p5 }
  0x1c   : > { %p2126_p1 = pnand %p2124_p0, %p2114_p13 }
  0x1e   : > { %p2127_p2 = pneg %p2126_p1 }
  0x20   : > { %p2134_p3 = pnand %p2133_p9, %p2127_p2 }
  0x22   : > { %2137 = shalt.err (!%p2134_p3)
}
  0x23   : > { %s2729_s18 = smov 64   ;;  %s2730_s19 = smov 4  }
  0x24   : > { %s2742_s2 = sld [smem:[#allocation26_spill]]  ;;  %s2149_s22 = scalar_lea.vmem %s263_s16, 5120 }
  0x25   : > { %p2150_p4 = scmp.ne.s32.totalorder %s263_s16, %s2149_s22  ;;  %p2157_p1 = scmp.lt.s32.totalorder %s263_s16, %s263_s16 }
  0x26   : > { %p2158_p3 = scmp.lt.s32.totalorder %s2149_s22, %s2149_s22 }
  0x27   : > { %p2152_p10 = pnand %p2150_p4, %p2114_p13 }
  0x28   : > { %p2159_p2 = por %p2158_p3, %p2157_p1 }
  0x29   : > { %p2153_p0 = pneg %p2152_p10 }
  0x2a   : > { %1949 = dma.hbm_to_vmem [thread:$0]  (!%p2480_p11), %s2742_s2, 2048, %s247_s12, [#allocation8], %s2729_s18, %s2729_s18, %s2730_s19  }
  0x2b   : > { %p2160_p5 = pnand %p2159_p2, %p2153_p0 }
  0x2d   : > { %2163 = shalt.err (!%p2160_p5)
}
  0x2e   : > { %s2743_s4 = sld [smem:[#allocation27_spill]]  ;;  %s2370_s11 = smov [#allocation12]  }
  0x2f   : > { %s275_s12 = sshll.u32 %s2370_s11, 4  ;;  %s276_s12 = int_to_ptr.vmem [resolvable:$true] %s275_s12 }
  0x30   : > { %s2175_s15 = scalar_lea.vmem %s276_s12, 80  ;;  %s2182_s17 = scalar_lea.vmem %s276_s12, 96 }
  0x31   : > { %p2176_p7 = scmp.ne.s32.totalorder %s276_s12, %s2175_s15  ;;  %p2183_p10 = scmp.lt.s32.totalorder %s276_s12, %s276_s12 }
  0x32   : > { %p2184_p0 = scmp.lt.s32.totalorder %s2182_s17, %s2175_s15 }
  0x33   : > { %p2178_p9 = pnand %p2176_p7, %p2114_p13 }
  0x34   : > { %1952 = dma.hbm_to_vmem [thread:$0]  (!%p2480_p11), %s2743_s4, 5120, %s263_s16, [#allocation11], %s2729_s18, %s2729_s18, %s2730_s19  }
  0x35   : > { %p2179_p4 = pneg %p2178_p9  ;;  %p2185_p1 = por %p2184_p0, %p2183_p10 }
  0x37   : > { %p2186_p3 = pnand %p2185_p1, %p2179_p4 }
  0x39   : > { %2189 = shalt.err (!%p2186_p3)
}
  0x3a   : > { %s2371_s20 = smov 16   ;;  %s2372_s16 = smov 1  }
  0x3b   : > { %s2744_s5 = sld [smem:[#allocation28_spill]]  ;;  %s2521_s23 = sand.u32 1, %s2352_s26  }
  0x3c   : > { %s36_s24 = sadd.s32 1, %s2360_s28  ;;  %s1628_s11 = sshll.u32 %s2521_s23, 4 }
  0x3d   : > { %p37_p13 = scmp.ge.s32.totalorder %s36_s24, 4  ;;  %s1731_s15 = sshll.u32 %s2360_s28, 7 }
  0x3e   : > { %s293_s17 = scalar_lea.vmem [#allocation4], %s1628_s11  ;;  %s2746_s0 = sld [smem:[#allocation25_spill]] }
  0x3f   : > { %s303_s18 = sshll.u32 %s293_s17, 4  ;;  %s2762_s24 = smov (%p37_p13, %s36_s24), 0  ;;  %s304_s18 = int_to_ptr.vmem [resolvable:$true] %s303_s18 }
  0x40   : > { %2745 = sst [smem:[#allocation23_spill]] %s2762_s24  ;;  %s290_s22 = scalar_lea.sflag [#allocation5], %s2521_s23 }
  0x41   : > { %1955 = dma.hbm_to_vmem [thread:$0]  (!%p2480_p11), %s2744_s5, 80, %s276_s12, [#allocation11], %s2371_s20, %s2371_s20, %s2372_s16  }
  0x42   : > { %s44_s12 = ssub.s32 %s2360_s28, %s2762_s24  ;;  %s313_s20 = sand.u32 1, %s2364_s29  }
  0x43   : > { %p46_p11 = scmp.eq.s32.totalorder %s44_s12, 0  ;;  %p2192_p2 = pneg %p2484_p12 }
  0x44   : > { %s302_s21 = scalar_lea.hbm %s2746_s0, %s1731_s15  ;;  %s2203_s2 = scalar_lea.vmem %s304_s18, 256 }
  0x45   : > { %s2537_s16 = scalar_select %p46_p11, %s2352_s26, %s48_s8  }
  0x46   : > { %p2204_p5 = scmp.ne.s32.totalorder %s304_s18, %s2203_s2  ;;  %s2373_s11 = smov [#allocation4]  }
  0x47   : > { %2747 = sst [smem:[#allocation24_spill]] %s2537_s16  ;;  %s2208_s19 = sshll.u32 %s2373_s11, 4  ;;  %s2209_s19 = int_to_ptr.vmem [resolvable:$false] %s2208_s19 }
  0x48   : > { %p2206_p7 = pnand %p2204_p5, %p2192_p2  ;;  %s2210_s15 = scalar_lea.vmem %s2209_s19, 512 }
  0x49   : > { %p2211_p4 = scmp.lt.s32.totalorder %s304_s18, %s2209_s19  ;;  %p2212_p10 = scmp.lt.s32.totalorder %s2210_s15, %s2203_s2 }
  0x4a   : > { %p2207_p9 = pneg %p2206_p7 }
  0x4b   : > { %p2213_p0 = por %p2212_p10, %p2211_p4 }
  0x4d   : > { %p2214_p1 = pnand %p2213_p0, %p2207_p9 }
  0x4f   : > { %2217 = shalt.err (!%p2214_p1)
}
  0x50   : > { %s2374_s8 = smov 512   ;;  %s2375_s17 = smov 128  }
  0x51   : > { %s2376_s13 = smov 8   ;;  %s1631_s12 = sshll.u32 %s2521_s23, 7 }
  0x52   : > { %1959 = dma.hbm_to_vmem [thread:$0]  (!%p2484_p12), %s302_s21, 256, %s304_s18, %s290_s22, %s2374_s8, %s2375_s17, %s2376_s13  }
  0x53   : > { %s1732_s0 = sshll.u32 %s2360_s28, 11  ;;  %s317_s19 = scalar_lea.vmem [#allocation7], %s1631_s12 }
  0x54   : > { %s323_s5 = scalar_lea.hbm %s2721_s1, %s1732_s0  ;;  %s324_s2 = sshll.u32 %s317_s19, 4  ;;  %s325_s2 = int_to_ptr.vmem [resolvable:$true] %s324_s2 }
  0x55   : > { %s314_s15 = scalar_lea.sflag [#allocation8], %s313_s20  ;;  %s2231_s24 = scalar_lea.vmem %s325_s2, 2048 }
  0x56   : > { %p2232_p3 = scmp.ne.s32.totalorder %s325_s2, %s2231_s24  ;;  %s2377_s16 = smov [#allocation7]  }
  0x57   : > { %s2236_s26 = sshll.u32 %s2377_s16, 4  ;;  %s2237_s26 = int_to_ptr.vmem [resolvable:$false] %s2236_s26 }
  0x58   : > { %p2234_p13 = pnand %p2232_p3, %p2192_p2  ;;  %s2238_s18 = scalar_lea.vmem %s2237_s26, 4096 }
  0x59   : > { %p2239_p5 = scmp.lt.s32.totalorder %s325_s2, %s2237_s26  ;;  %p2240_p7 = scmp.lt.s32.totalorder %s2238_s18, %s2231_s24 }
  0x5a   : > { %p2235_p11 = pneg %p2234_p13 }
  0x5b   : > { %p2241_p9 = por %p2240_p7, %p2239_p5 }
  0x5d   : > { %p2242_p4 = pnand %p2241_p9, %p2235_p11 }
  0x5f   : > { %2245 = shalt.err (!%p2242_p4)
}
  0x60   : > { %s2748_s0 = smov 4   ;;  %s2749_s4 = smov 64  }
  0x61   : > { %1962 = dma.hbm_to_vmem [thread:$0]  (!%p2484_p12), %s323_s5, 2048, %s325_s2, %s314_s15, %s2749_s4, %s2749_s4, %s2748_s0  }
  0x62   : > { %336 = sbr.rel (%p2471_p8) target bundleno = 833 (0x341), region = 44  ;;  %s338_s23 = sand.u32 (!%p2471_p8), 1, %s2348_s25  }
  0x63   : > { %s1635_s21 = sshll.u32 (!%p2471_p8), %s338_s23, 4  ;;  %s339_s20 = scalar_lea.sflag (!%p2471_p8), [#allocation5], %s338_s23 }
  0x64   : > { %s342_s16 = scalar_lea.vmem (!%p2471_p8), [#allocation4], %s1635_s21 }
  0x67   : > { %2319 = dma.done.wait (%p2466_p6), %s339_s20, 256  }
  0x68   : > { %2321 = vsyncadd (%p2466_p6), %s339_s20, 4294967040  ;;  %s347_s26 = sand.u32 1, %s2455_s30   ;;  %s1636_s14 = sshll.u32 %s338_s23, 7 }
  0x69   : > { %s348_s24 = scalar_lea.sflag [#allocation8], %s347_s26  ;;  %s2568_s5 = scalar_lea.vmem [#allocation7], %s1636_s14 }
  0x6a   : > { %2323 = dma.done.wait (%p2466_p6), %s348_s24, 2048  }
  0x6b   : > { %2325 = vsyncadd (%p2466_p6), %s348_s24, 4294965248  ;;  %p2750_p8 = scmp.eq.s32.totalorder %s2455_s30, 0 }
  0x6d   : > { %2327 = dma.done.wait (%p2750_p8), [#allocation8], 2048   ;;  %p2751_p12 = pmov %p2750_p8 }
  0x6e   : > { %p2752_p2 = pmov %p2750_p8 }
  0x6f   : > { %2329 = vsyncadd (%p2751_p12), [#allocation8], 4294965248 }
  0x70   : > { %2331 = dma.done.wait (%p2752_p2), [#allocation11], 5200   ;;  %p2753_p10 = pmov %p2752_p2 }
  0x71   : > { %v396_v0 = vld [vmem:[%s342_s16] sm:$0xff]  ;;  %v397_v1 = vld [vmem:[%s342_s16 + $0x8] sm:$0xff]  ;;  %p1640_p6 = scmp.ne.s32.totalorder %s2356_s27, 0 }
  0x72   : > { %2333 = vsyncadd (%p2753_p10), [#allocation11], 4294962096  ;;  %v398_v2 = vunpack.c.l.bf16 %v396_v0  ;;  %v399_v3 = vunpack.c.h.bf16 %v396_v0  ;;  %v400_v4 = vunpack.c.l.bf16 %v397_v1  ;;  %v401_v5 = vunpack.c.h.bf16 %v397_v1 }
  0x74   : > { %v402_v6 = vrot.slane %v398_v2, 4  ;;  %v408_v7 = vrot.slane %v399_v3, 4  ;;  %v414_v8 = vrot.slane %v400_v4, 4  ;;  %v420_v9 = vrot.slane %v401_v5, 4 }
  0x76   : > { %v403_v10 = vadd.f32 %v402_v6, %v398_v2  ;;  %v409_v11 = vadd.f32 %v408_v7, %v399_v3  ;;  %v415_v12 = vadd.f32 %v414_v8, %v400_v4  ;;  %v421_v13 = vadd.f32 %v420_v9, %v401_v5 }
  0x78   : > { %v404_v14 = vrot.slane %v403_v10, 2  ;;  %v410_v15 = vrot.slane %v409_v11, 2  ;;  %v416_v16 = vrot.slane %v415_v12, 2  ;;  %v422_v17 = vrot.slane %v421_v13, 2 }
  0x7a   : > { %v405_v18 = vadd.f32 %v404_v14, %v403_v10  ;;  %v411_v19 = vadd.f32 %v410_v15, %v409_v11  ;;  %v417_v20 = vadd.f32 %v416_v16, %v415_v12  ;;  %v423_v21 = vadd.f32 %v422_v17, %v421_v13 }
  0x7c   : > { %v406_v22 = vrot.slane %v405_v18, 1  ;;  %v412_v23 = vrot.slane %v411_v19, 1  ;;  %v418_v24 = vrot.slane %v417_v20, 1  ;;  %v424_v25 = vrot.slane %v423_v21, 1  ;;  %434 = sbr.rel (%p1640_p6) target bundleno = 131 (0x83), region = 68 }
  0x7e   : > { %v407_v26 = vadd.f32 %v406_v22, %v405_v18  ;;  %v413_v27 = vadd.f32 %v412_v23, %v411_v19  ;;  %v419_v28 = vadd.f32 %v418_v24, %v417_v20  ;;  %v425_v29 = vadd.f32 %v424_v25, %v423_v21 }
  0x80   : > { %v427_v30 = vmul.f32 0.125, %v407_v26  ;;  %v428_v31 = vmul.f32 0.125, %v413_v27  ;;  %v429_v32 = vmul.f32 0.125, %v419_v28  ;;  %v430_v33 = vmul.f32 0.125, %v425_v29 }
  0x81   : > { %v2378_v34 = vmov 0.0  }
  0x82   : > { %435 = vst [vmem:[#allocation3] sm:$0xf] %v2378_v34 }
  0x83 PF: > { %v2040_v35 = vld [vmem:[%s2568_s5 + $0x78] sm:$0xff]   ;;  %v474_v37 = vpack.c.bf16 %v428_v31, %v428_v31  ;;  %v476_v38 = vpack.c.bf16 %v430_v33, %v430_v33  ;;  %v2042_v39 = vld [vmem:[%s2568_s5 + $0x70] sm:$0xff]   ;;  %vm462_vm0 = vcmask 1041409   ;;  %v2044_v43 = vld [vmem:[%s2568_s5 + $0x68] sm:$0xff]   ;;  %v445_v50 = vlaneseq  ;;  %s1657_s9 = sshll.u32 %s2356_s27, 1  ;;  %p1658_p0 = scmp.ne.s32.totalorder %s2356_s27, 3 }
  0x84   : > { %v2041_v36 = vld [vmem:[%s2568_s5 + $0x38] sm:$0xff]   ;;  %1733 = vmatprep.subr.bf16.mxu0 %v2040_v35  ;;  %v2043_v40 = vld [vmem:[%s2568_s5 + $0x30] sm:$0xff]   ;;  %v2045_v46 = vld [vmem:[%s2568_s5 + $0x28] sm:$0xff]   ;;  %v2379_v53 = vmov 1983009808   ;;  %v441_v56 = vcombine.low %v427_v30, %v428_v31  ;;  %v449_v59 = vcombine.low %v429_v32, %v430_v33  ;;  %v473_v60 = vpack.c.bf16 %v427_v30, %v427_v30  ;;  %s660_s10 = scalar_lea.vmem [#allocation2], %s1657_s9 }
  0x85   : > { %1734 = vmatpush3.bf16.msra.mxu0 %v2041_v36  ;;  %v514_v41 = vunpack.c.l.b16 %v474_v37  ;;  %v516_v42 = vunpack.c.l.b16 %v476_v38  ;;  %v2046_v47 = vld [vmem:[%s2568_s5 + $0x60] sm:$0xff]   ;;  %v2048_v49 = vld [vmem:[%s2568_s5 + $0x58] sm:$0xff]   ;;  %v2050_v52 = vld [vmem:[%s2568_s5 + $0x50] sm:$0xff]   ;;  %v443_v54 = vunpack.c.l.s4 %v2379_v53  ;;  %v446_v55 = vshrl.u32 %v445_v50, 7 }
  0x86   : > { %1735 = vmatprep.subr.bf16.mxu0 %v2042_v39  ;;  %v2047_v48 = vld [vmem:[%s2568_s5 + $0x20] sm:$0xff]   ;;  %v2049_v51 = vld [vmem:[%s2568_s5 + $0x18] sm:$0xff]   ;;  %v2051_v57 = vld [vmem:[%s2568_s5 + $0x10] sm:$0xff]   ;;  %v475_v61 = vpack.c.bf16 %v429_v32, %v429_v32  ;;  %v513_v3 = vunpack.c.l.b16 %v473_v60  ;;  %vm464_vm1 = vcmask 1043459   ;;  %vm466_vm2 = vcmask 1045509  }
  0x87   : > { %v518_v44 = vsel %vm462_vm0, %v516_v42, %v514_v41  ;;  %v444_v58 = vunpack.c.0.s8 %v443_v54  ;;  %v2052_v62 = vld [vmem:[%s2568_s5 + $0x48] sm:$0xff]   ;;  %v2054_v5 = vld [vmem:[%s2568_s5 + $0x40] sm:$0xff]   ;;  %vm468_vm3 = vcmask 1047559  }
  0x88   : > { %v520_v45 = vpack.c.b16 %v518_v44, %v518_v44  ;;  %v2053_v0 = vld [vmem:[%s2568_s5 + $0x8] sm:$0xff]   ;;  %v515_v4 = vunpack.c.l.b16 %v475_v61  ;;  %v2055_v7 = vld [vmem:[%s2568_s5] sm:$0xff]  }
  0x89   : > { %1736 = vmatpush3.bf16.msra.mxu0 %v2043_v40  ;;  %v2597_v63 = vsub.s32 %v444_v58, %v446_v55  ;;  %v436_v10 = vld [vmem:[#allocation3] sm:$0xf] }
  0x8a   : > { %1737 = vmatprep.subr.bf16.mxu0 %v2044_v43  ;;  %651 = vmatprep.mubr.bf16.mxu0 %v520_v45  ;;  %v517_v9 = vsel %vm462_vm0, %v515_v4, %v513_v3 }
  0x8b   : > { %v448_v1 = vrot.slane %v441_v56, %v2597_v63  ;;  %v456_v2 = vrot.slane %v449_v59, %v2597_v63  ;;  %v519_v14 = vpack.c.b16 %v517_v9, %v517_v9 }
  0x8d   : > { %1738 = vmatpush3.bf16.msra.mxu0 %v2045_v46  ;;  %v461_v6 = vrot.slane %v456_v2, 7 }
  0x8e   : > { %1739 = vmatprep.subr.bf16.mxu0 %v2046_v47 }
  0x8f   : > { %v463_v8 = vsel %vm462_vm0, %v461_v6, %v448_v1 }
  0x90   : > { %v465_v11 = vsel %vm464_vm1, %v461_v6, %v463_v8 }
  0x91   : > { %1740 = vmatpush3.bf16.msra.mxu0 %v2047_v48  ;;  %v467_v12 = vsel %vm466_vm2, %v461_v6, %v465_v11 }
  0x92   : > { %1741 = vmatprep.subr.bf16.mxu0 %v2048_v49  ;;  %v469_v13 = vsel %vm468_vm3, %v461_v6, %v467_v12 }
  0x93   : > { %v471_v15 = vadd.f32 %v469_v13, %v436_v10 }
  0x95   : > { %1742 = vmatpush3.bf16.msra.mxu0 %v2049_v51  ;;  %472 = vst [vmem:[#allocation3] sm:$0xf] %v471_v15 }
  0x96   : > { %1743 = vmatprep.subr.bf16.mxu0 %v2050_v52 }
  0x99   : > { %1744 = vmatpush3.bf16.msra.mxu0 %v2051_v57 }
  0x9a   : > { %1745 = vmatprep.subr.bf16.mxu0 %v2052_v62 }
  0x9d   : > { %1746 = vmatpush3.bf16.msra.mxu0 %v2053_v0 }
  0x9e   : > { %1747 = vmatprep.subr.bf16.mxu0 %v2054_v5 }
  0xa1   : > { %1748 = vmatpush3.bf16.msra.mxu0 %v2055_v7 }
  0xa4   : > { %652 = vmatmul.mubr.bf16.vlgmr.msra.gmra.mxu0 %v519_v14 }
 0x164   : > { %v1749_v16 = vpop.f32.mrf.mxu0 }
 0x166   : > { %v1750_v17 = vpop.f32.mrf.mxu0  ;;  %665 = sbr.rel (%p1658_p0) target bundleno = 802 (0x322), region = 72 }
 0x167   : > { %v1751_v18 = vadd.f32 %v1750_v17, %v1749_v16 }
 0x168   : > { %v1752_v19 = vpop.f32.mrf.mxu0 }
 0x169   : > { %661 = vst [vmem:[%s660_s10] sm:$0x3] %v1751_v18 }
 0x16a   : > { %v1753_v20 = vpop.f32.mrf.mxu0 }
 0x16b   : > { %v2056_v21 = vld [vmem:[#allocation9 + $0x78] sm:$0xff]   ;;  %v2380_v23 = vmov 0.0   ;;  %v2058_v24 = vld [vmem:[#allocation9 + $0x70] sm:$0xff]   ;;  %vm2381_vm4 = vmmov 0   ;;  %v2060_v26 = vld [vmem:[#allocation9 + $0x68] sm:$0xff]  }
 0x16c   : > { %v2057_v22 = vld [vmem:[#allocation9 + $0x38] sm:$0xff]   ;;  %1822 = vmatprep.subr.bf16.mxu1 %v2380_v23  ;;  %1755 = vmatprep.subr.bf16.mxu0 %v2056_v21  ;;  %v2059_v25 = vld [vmem:[#allocation9 + $0x30] sm:$0xff]   ;;  %v2061_v27 = vld [vmem:[#allocation9 + $0x28] sm:$0xff]  }
 0x16d   : > { %1838 = vmatprep.mubr.msk.bf16.mxu1 %vm2381_vm4, %v2380_v23  ;;  %1756 = vmatpush3.bf16.msra.mxu0 %v2057_v22  ;;  %v2062_v28 = vld [vmem:[#allocation9 + $0x60] sm:$0xff]   ;;  %v2064_v30 = vld [vmem:[#allocation9 + $0x58] sm:$0xff]   ;;  %v2066_v32 = vld [vmem:[#allocation9 + $0x50] sm:$0xff]  }
 0x16e   : > { %1757 = vmatprep.subr.bf16.mxu0 %v2058_v24  ;;  %v2063_v29 = vld [vmem:[#allocation9 + $0x20] sm:$0xff]   ;;  %v2065_v31 = vld [vmem:[#allocation9 + $0x18] sm:$0xff]   ;;  %v2067_v36 = vld [vmem:[#allocation9 + $0x10] sm:$0xff]  }
 0x16f   : > { %v666_v33 = vld [vmem:[#allocation3] sm:$0xf]  ;;  %v2073_v38 = vld [vmem:[#allocation10 + $0x30] sm:$0xff]   ;;  %v2068_v39 = vld [vmem:[#allocation9 + $0x48] sm:$0xff]  }
 0x170   : > { %v667_v34 = vmul.f32 0.25, %v666_v33  ;;  %v2072_v35 = vld [vmem:[#allocation10 + $0x38] sm:$0xff]   ;;  %v2069_v41 = vld [vmem:[#allocation9 + $0x8] sm:$0xff]   ;;  %v2070_v44 = vld [vmem:[#allocation9 + $0x40] sm:$0xff]  }
 0x171   : > { %1758 = vmatpush3.bf16.msra.mxu0 %v2059_v25  ;;  %1823 = vmatpush3.bf16.msra.mxu1 %v2072_v35  ;;  %v2074_v43 = vld [vmem:[#allocation10 + $0x28] sm:$0xff]   ;;  %v851_v45 = vld [vmem:[#allocation2] sm:$0x3]  ;;  %v2071_v48 = vld [vmem:[#allocation9] sm:$0xff]  }
 0x172   : > { %1759 = vmatprep.subr.bf16.mxu0 %v2060_v26  ;;  %v675_v37 = vrot.slane %v667_v34, %v2597_v63  ;;  %1824 = vmatprep.subr.bf16.mxu1 %v2380_v23  ;;  %v1675_v46 = vld [vmem:[%s2723_s3] ss:$0 sm:$0xff]  ;;  %v2075_v49 = vld [vmem:[#allocation10 + $0x20] sm:$0xff]   ;;  %v2076_v51 = vld [vmem:[#allocation10 + $0x18] sm:$0xff]   ;;  %v901_v1 = vpack.c.bf16 %v851_v45, %v851_v45 }
 0x173   : > { %v891_v47 = vadd.f32 %v1675_v46, %v851_v45  ;;  %v2080_v52 = vld [vmem:[#allocation10 + $0x78] sm:$0xff]   ;;  %v2077_v53 = vld [vmem:[#allocation10 + $0x10] sm:$0xff]   ;;  %v2078_v55 = vld [vmem:[#allocation10 + $0x8] sm:$0xff]  }
 0x174   : > { %v676_v40 = vcombine.high %v675_v37, %v675_v37  ;;  %v679_v50 = vpack.c.bf16 %v675_v37, %v675_v37  ;;  %v2082_v54 = vld [vmem:[#allocation10 + $0x70] sm:$0xff]   ;;  %v2084_v56 = vld [vmem:[#allocation10 + $0x68] sm:$0xff]   ;;  %v2079_v57 = vld [vmem:[#allocation10] sm:$0xff]  }
 0x175   : > { %1760 = vmatpush3.bf16.msra.mxu0 %v2061_v27  ;;  %1825 = vmatpush3.bf16.msra.mxu1 %v2073_v38  ;;  %896 = vst [vmem:[#allocation13] sm:$0x3] %v891_v47  ;;  %v852_v58 = vld [vmem:[#allocation2 + $0x2] sm:$0x3]  ;;  %v1676_v59 = vld [vmem:[%s2723_s3 + $0x1] ss:$0 sm:$0xff] }
 0x176   : > { %1761 = vmatprep.subr.bf16.mxu0 %v2062_v28  ;;  %v680_v42 = vpack.c.bf16 %v676_v40, %v676_v40  ;;  %1826 = vmatprep.subr.bf16.mxu1 %v2380_v23  ;;  %v2629_v60 = vld [vmem:[#allocation2 + $0x4] sm:$0x3]  ;;  %v892_v61 = vadd.f32 %v1676_v59, %v852_v58  ;;  %v1677_v62 = vld [vmem:[%s2723_s3 + $0x2] ss:$0 sm:$0xff]  ;;  %v2086_v63 = vld [vmem:[#allocation10 + $0x60] sm:$0xff]   ;;  %v902_v10 = vpack.c.bf16 %v852_v58, %v852_v58 }
 0x177   : > { %v893_v0 = vadd.f32 %v1677_v62, %v2629_v60  ;;  %v2081_v2 = vld [vmem:[#allocation10 + $0xb8] sm:$0xff]   ;;  %v2083_v4 = vld [vmem:[#allocation10 + $0xb0] sm:$0xff]   ;;  %v2085_v6 = vld [vmem:[#allocation10 + $0xa8] sm:$0xff]   ;;  %v903_v19 = vpack.c.bf16 %v2629_v60, %v2629_v60 }
 0x178   : > { %841 = vmatprep.mubr.bf16.mxu0 %v680_v42  ;;  %897 = vst [vmem:[#allocation13 + $0x2] sm:$0x3] %v892_v61  ;;  %v2088_v3 = vld [vmem:[#allocation10 + $0x58] sm:$0xff]   ;;  %v2090_v5 = vld [vmem:[#allocation10 + $0x50] sm:$0xff]   ;;  %v2092_v7 = vld [vmem:[#allocation10 + $0x48] sm:$0xff]  }
 0x179   : > { %1762 = vmatpush3.bf16.msra.mxu0 %v2063_v29  ;;  %1827 = vmatpush3.bf16.msra.mxu1 %v2074_v43  ;;  %898 = vst [vmem:[#allocation13 + $0x4] sm:$0x3] %v893_v0  ;;  %v2087_v8 = vld [vmem:[#allocation10 + $0xa0] sm:$0xff]   ;;  %v2089_v11 = vld [vmem:[#allocation10 + $0x98] sm:$0xff]   ;;  %v2091_v13 = vld [vmem:[#allocation10 + $0x90] sm:$0xff]  }
 0x17a   : > { %1763 = vmatprep.subr.bf16.mxu0 %v2064_v30  ;;  %1828 = vmatprep.subr.bf16.mxu1 %v2380_v23  ;;  %v2094_v9 = vld [vmem:[#allocation10 + $0x40] sm:$0xff]   ;;  %v2096_v12 = vld [vmem:[#allocation10 + $0xf8] sm:$0xff]   ;;  %v2097_v14 = vld [vmem:[#allocation10 + $0xf0] sm:$0xff]  }
 0x17b   : > { %v2093_v15 = vld [vmem:[#allocation10 + $0x88] sm:$0xff]   ;;  %v2095_v17 = vld [vmem:[#allocation10 + $0x80] sm:$0xff]   ;;  %v2098_v20 = vld [vmem:[#allocation10 + $0x138] sm:$0xff]  }
 0x17c   : > { %v2099_v16 = vld [vmem:[#allocation10 + $0xe8] sm:$0xff]   ;;  %v2101_v18 = vld [vmem:[#allocation10 + $0xe0] sm:$0xff]   ;;  %v2103_v21 = vld [vmem:[#allocation10 + $0xd8] sm:$0xff]  }
 0x17d   : > { %1764 = vmatpush3.bf16.msra.mxu0 %v2065_v31  ;;  %1829 = vmatpush3.bf16.msra.mxu1 %v2075_v49  ;;  %v2100_v22 = vld [vmem:[#allocation10 + $0x130] sm:$0xff]   ;;  %v2102_v25 = vld [vmem:[#allocation10 + $0x128] sm:$0xff]   ;;  %v2104_v26 = vld [vmem:[#allocation10 + $0x120] sm:$0xff]  }
 0x17e   : > { %1765 = vmatprep.subr.bf16.mxu0 %v2066_v32  ;;  %1830 = vmatprep.subr.bf16.mxu1 %v2380_v23  ;;  %v2105_v24 = vld [vmem:[#allocation10 + $0xd0] sm:$0xff]   ;;  %v2106_v27 = vld [vmem:[#allocation10 + $0x118] sm:$0xff]   ;;  %v2107_v28 = vld [vmem:[#allocation10 + $0xc8] sm:$0xff]  }
 0x17f   : > { %v2108_v29 = vld [vmem:[#allocation10 + $0x110] sm:$0xff]   ;;  %v2109_v30 = vld [vmem:[#allocation10 + $0xc0] sm:$0xff]   ;;  %v2110_v31 = vld [vmem:[#allocation10 + $0x108] sm:$0xff]  }
 0x180   : > { %v854_v32 = vld [vmem:[#allocation2 + $0x6] sm:$0x3]  ;;  %v1678_v33 = vld [vmem:[%s2723_s3 + $0x3] ss:$0 sm:$0xff]  ;;  %v1679_v42 = vld [vmem:[%s2723_s3 + $0x4] ss:$0 sm:$0xff] }
 0x181   : > { %1766 = vmatpush3.bf16.msra.mxu0 %v2067_v36  ;;  %1831 = vmatpush3.bf16.msra.mxu1 %v2076_v51  ;;  %v894_v34 = vadd.f32 %v1678_v33, %v854_v32  ;;  %v904_v35 = vpack.c.bf16 %v854_v32, %v854_v32  ;;  %v2111_v36 = vld [vmem:[#allocation10 + $0x100] sm:$0xff]  }
 0x182   : > { %1767 = vmatprep.subr.bf16.mxu0 %v2068_v39  ;;  %1832 = vmatprep.subr.bf16.mxu1 %v2380_v23  ;;  %v1680_v46 = vld [vmem:[#allocation12] ss:$0 sm:$0xff]  ;;  %v1681_v51 = vld [vmem:[#allocation12 + $0x1] ss:$0 sm:$0xff] }
 0x183   : > { %899 = vst [vmem:[#allocation13 + $0x6] sm:$0x3] %v894_v34 }
 0x185   : > { %1768 = vmatpush3.bf16.msra.mxu0 %v2069_v41  ;;  %1833 = vmatpush3.bf16.msra.mxu1 %v2077_v53 }
 0x186   : > { %1769 = vmatprep.subr.bf16.mxu0 %v2070_v44  ;;  %1834 = vmatprep.subr.bf16.mxu1 %v2380_v23 }
 0x189   : > { %1770 = vmatpush3.bf16.msra.mxu0 %v2071_v48  ;;  %1835 = vmatpush3.bf16.msra.mxu1 %v2078_v55 }
 0x18a   : > { %1842 = vmatprep.subr.bf16.mxu0 %v2380_v23  ;;  %1836 = vmatprep.subr.bf16.mxu1 %v2380_v23 }
 0x18c   : > { %842 = vmatmul.mubr.bf16.vlgmr.msra.gmra.mxu0 %v679_v50 }
 0x18d   : > { %1843 = vmatpush3.bf16.msra.mxu0 %v2080_v52  ;;  %1858 = vmatprep.mubr.msk.bf16.mxu0 %vm2381_vm4, %v2380_v23 }
 0x18e   : > { %1844 = vmatprep.subr.bf16.mxu0 %v2380_v23  ;;  %1837 = vmatpush3.bf16.msra.mxu1 %v2079_v57  ;;  %v1682_v57 = vld [vmem:[#allocation12 + $0x2] ss:$0 sm:$0xff] }
 0x18f   : > { %1862 = vmatprep.subr.bf16.mxu1 %v2380_v23 }
 0x191   : > { %1845 = vmatpush3.bf16.msra.mxu0 %v2082_v54  ;;  %1839 = vmatmul.mubr.bf16.vlgmr.msra.gmra.mxu1 %v901_v1 }
 0x192   : > { %1846 = vmatprep.subr.bf16.mxu0 %v2380_v23  ;;  %1863 = vmatpush3.bf16.msra.mxu1 %v2081_v2 }
 0x193   : > { %1864 = vmatprep.subr.bf16.mxu1 %v2380_v23  ;;  %1878 = vmatprep.mubr.msk.bf16.mxu1 %vm2381_vm4, %v2380_v23 }
 0x195   : > { %1847 = vmatpush3.bf16.msra.mxu0 %v2084_v56 }
 0x196   : > { %1848 = vmatprep.subr.bf16.mxu0 %v2380_v23  ;;  %1865 = vmatpush3.bf16.msra.mxu1 %v2083_v4 }
 0x197   : > { %1866 = vmatprep.subr.bf16.mxu1 %v2380_v23 }
 0x199   : > { %1849 = vmatpush3.bf16.msra.mxu0 %v2086_v63  ;;  %v1683_v63 = vld [vmem:[#allocation12 + $0x3] ss:$0 sm:$0xff] }
 0x19a   : > { %1850 = vmatprep.subr.bf16.mxu0 %v2380_v23  ;;  %1867 = vmatpush3.bf16.msra.mxu1 %v2085_v6 }
 0x19b   : > { %1868 = vmatprep.subr.bf16.mxu1 %v2380_v23 }
 0x19d   : > { %1851 = vmatpush3.bf16.msra.mxu0 %v2088_v3 }
 0x19e   : > { %1852 = vmatprep.subr.bf16.mxu0 %v2380_v23  ;;  %1869 = vmatpush3.bf16.msra.mxu1 %v2087_v8 }
 0x19f   : > { %1870 = vmatprep.subr.bf16.mxu1 %v2380_v23 }
 0x1a1   : > { %1853 = vmatpush3.bf16.msra.mxu0 %v2090_v5  ;;  %v1684_v5 = vld [vmem:[#allocation12 + $0x4] ss:$0 sm:$0xff] }
 0x1a2   : > { %1854 = vmatprep.subr.bf16.mxu0 %v2380_v23  ;;  %1871 = vmatpush3.bf16.msra.mxu1 %v2089_v11 }
 0x1a3   : > { %1872 = vmatprep.subr.bf16.mxu1 %v2380_v23 }
 0x1a5   : > { %1855 = vmatpush3.bf16.msra.mxu0 %v2092_v7 }
 0x1a6   : > { %1856 = vmatprep.subr.bf16.mxu0 %v2380_v23  ;;  %1873 = vmatpush3.bf16.msra.mxu1 %v2091_v13 }
 0x1a7   : > { %1874 = vmatprep.subr.bf16.mxu1 %v2380_v23 }
 0x1a9   : > { %1857 = vmatpush3.bf16.msra.mxu0 %v2094_v9 }
 0x1aa   : > { %1882 = vmatprep.subr.bf16.mxu0 %v2380_v23  ;;  %1875 = vmatpush3.bf16.msra.mxu1 %v2093_v15 }
 0x1ab   : > { %1876 = vmatprep.subr.bf16.mxu1 %v2380_v23 }
 0x1ac   : > { %1859 = vmatmul.mubr.bf16.vlgmr.msra.gmra.mxu0 %v902_v10 }
 0x1ad   : > { %1883 = vmatpush3.bf16.msra.mxu0 %v2096_v12  ;;  %1898 = vmatprep.mubr.msk.bf16.mxu0 %vm2381_vm4, %v2380_v23 }
 0x1ae   : > { %1884 = vmatprep.subr.bf16.mxu0 %v2380_v23  ;;  %1877 = vmatpush3.bf16.msra.mxu1 %v2095_v17 }
 0x1af   : > { %1902 = vmatprep.subr.bf16.mxu1 %v2380_v23 }
 0x1b1   : > { %1885 = vmatpush3.bf16.msra.mxu0 %v2097_v14  ;;  %1879 = vmatmul.mubr.bf16.vlgmr.msra.gmra.mxu1 %v903_v19 }
 0x1b2   : > { %1886 = vmatprep.subr.bf16.mxu0 %v2380_v23  ;;  %1903 = vmatpush3.bf16.msra.mxu1 %v2098_v20 }
 0x1b3   : > { %1904 = vmatprep.subr.bf16.mxu1 %v2380_v23  ;;  %1918 = vmatprep.mubr.msk.bf16.mxu1 %vm2381_vm4, %v2380_v23 }
 0x1b5   : > { %1887 = vmatpush3.bf16.msra.mxu0 %v2099_v16 }
 0x1b6   : > { %1888 = vmatprep.subr.bf16.mxu0 %v2380_v23  ;;  %1905 = vmatpush3.bf16.msra.mxu1 %v2100_v22 }
 0x1b7   : > { %1906 = vmatprep.subr.bf16.mxu1 %v2380_v23 }
 0x1b9   : > { %1889 = vmatpush3.bf16.msra.mxu0 %v2101_v18 }
 0x1ba   : > { %1890 = vmatprep.subr.bf16.mxu0 %v2380_v23  ;;  %1907 = vmatpush3.bf16.msra.mxu1 %v2102_v25 }
 0x1bb   : > { %1908 = vmatprep.subr.bf16.mxu1 %v2380_v23 }
 0x1bd   : > { %1891 = vmatpush3.bf16.msra.mxu0 %v2103_v21 }
 0x1be   : > { %1892 = vmatprep.subr.bf16.mxu0 %v2380_v23  ;;  %1909 = vmatpush3.bf16.msra.mxu1 %v2104_v26 }
 0x1bf   : > { %1910 = vmatprep.subr.bf16.mxu1 %v2380_v23 }
 0x1c1   : > { %1893 = vmatpush3.bf16.msra.mxu0 %v2105_v24 }
 0x1c2   : > { %1894 = vmatprep.subr.bf16.mxu0 %v2380_v23  ;;  %1911 = vmatpush3.bf16.msra.mxu1 %v2106_v27 }
 0x1c3   : > { %1912 = vmatprep.subr.bf16.mxu1 %v2380_v23 }
 0x1c5   : > { %1895 = vmatpush3.bf16.msra.mxu0 %v2107_v28 }
 0x1c6   : > { %1896 = vmatprep.subr.bf16.mxu0 %v2380_v23  ;;  %1913 = vmatpush3.bf16.msra.mxu1 %v2108_v29 }
 0x1c7   : > { %1914 = vmatprep.subr.bf16.mxu1 %v2380_v23 }
 0x1c9   : > { %1897 = vmatpush3.bf16.msra.mxu0 %v2109_v30 }
 0x1ca   : > { %1915 = vmatpush3.bf16.msra.mxu1 %v2110_v31 }
 0x1cb   : > { %1916 = vmatprep.subr.bf16.mxu1 %v2380_v23 }
 0x1cc   : > { %1899 = vmatmul.mubr.bf16.vlgmr.msra.gmra.mxu0 %v904_v35 }
 0x1ce   : > { %1917 = vmatpush3.bf16.msra.mxu1 %v2111_v36 }
 0x24c   : > { %v1771_v37 = vpop.f32.mrf.mxu0 }
 0x24e   : > { %v1772_v38 = vpop.f32.mrf.mxu0 }
 0x24f   : > { %v1773_v39 = vadd.f32 %v1772_v38, %v1771_v37 }
 0x250   : > { %v1774_v40 = vpop.f32.mrf.mxu0 }
 0x251   : > { %850 = vst [vmem:[#allocation2 + $0x8] sm:$0x3] %v1773_v39  ;;  %v1103_v47 = vpop.f32.mrf.mxu1 }
 0x252   : > { %v1775_v41 = vpop.f32.mrf.mxu0  ;;  %v1104_v48 = vadd.f32 %v1680_v46, %v1103_v47 }
 0x253   : > { %v1840_v23 = vpop.f32.mrf.mxu1 }
 0x254   : > { %1461 = vst [vmem:[#allocation14] sm:$0x3] %v1104_v48 }
 0x255   : > { %v1106_v49 = vpop.f32.mrf.mxu1 }
 0x257   : > { %v1841_v50 = vpop.f32.mrf.mxu1 }
 0x258   : > { %v855_v43 = vld [vmem:[#allocation2 + $0x8] sm:$0x3] }
 0x259   : > { %v895_v44 = vadd.f32 %v1679_v42, %v855_v43  ;;  %v905_v45 = vpack.c.bf16 %v855_v43, %v855_v43 }
 0x25b   : > { %900 = vst [vmem:[#allocation13 + $0x8] sm:$0x3] %v895_v44  ;;  %1919 = vmatmul.mubr.bf16.vlgmr.msra.gmra.mxu1 %v905_v45 }
 0x26c   : > { %v1191_v52 = vpop.f32.mrf.mxu0 }
 0x26d   : > { %v1192_v53 = vadd.f32 %v1681_v51, %v1191_v52 }
 0x26e   : > { %v1860_v54 = vpop.f32.mrf.mxu0 }
 0x26f   : > { %1462 = vst [vmem:[#allocation14 + $0x2] sm:$0x3] %v1192_v53 }
 0x270   : > { %v1194_v55 = vpop.f32.mrf.mxu0 }
 0x271   : > { %v1279_v58 = vpop.f32.mrf.mxu1 }
 0x272   : > { %v1861_v56 = vpop.f32.mrf.mxu0  ;;  %v1280_v59 = vadd.f32 %v1682_v57, %v1279_v58 }
 0x273   : > { %v1880_v60 = vpop.f32.mrf.mxu1 }
 0x274   : > { %1463 = vst [vmem:[#allocation14 + $0x4] sm:$0x3] %v1280_v59 }
 0x275   : > { %v1282_v61 = vpop.f32.mrf.mxu1 }
 0x277   : > { %v1881_v62 = vpop.f32.mrf.mxu1 }
 0x28c   : > { %v1367_v0 = vpop.f32.mrf.mxu0 }
 0x28d   : > { %v1368_v1 = vadd.f32 %v1683_v63, %v1367_v0 }
 0x28e   : > { %v1900_v2 = vpop.f32.mrf.mxu0 }
 0x28f   : > { %1464 = vst [vmem:[#allocation14 + $0x6] sm:$0x3] %v1368_v1 }
 0x290   : > { %v1370_v3 = vpop.f32.mrf.mxu0 }
 0x292   : > { %v1901_v4 = vpop.f32.mrf.mxu0 }
 0x31b   : > { %v1455_v6 = vpop.f32.mrf.mxu1 }
 0x31c   : > { %v1456_v7 = vadd.f32 %v1684_v5, %v1455_v6 }
 0x31d   : > { %v1920_v8 = vpop.f32.mrf.mxu1 }
 0x31e   : > { %1465 = vst [vmem:[#allocation14 + $0x8] sm:$0x3] %v1456_v7 }
 0x31f   : > { %v1458_v9 = vpop.f32.mrf.mxu1 }
 0x321   : > { %v1921_v10 = vpop.f32.mrf.mxu1 }
 0x322 PF: > { %p1970_p1 = scmp.eq.s32.totalorder %s2455_s30, 3  ;;  %s2382_s18 = smov [#allocation13]  }
 0x323   : > { %s1474_s0 = sshll.u32 %s2382_s18, 4  ;;  %s1475_s0 = int_to_ptr.vmem [resolvable:$true] %s1474_s0 }
 0x324   : > { %s2246_s4 = scalar_lea.vmem %s1475_s0, 160  ;;  %p2253_p5 = scmp.lt.s32.totalorder %s1475_s0, %s1475_s0 }
 0x325   : > { %p2247_p3 = scmp.ne.s32.totalorder %s1475_s0, %s2246_s4  ;;  %p2254_p7 = scmp.lt.s32.totalorder %s2246_s4, %s2246_s4 }
 0x327   : > { %p2248_p13 = pnand %p2247_p3, %p1970_p1  ;;  %p2255_p9 = por %p2254_p7, %p2253_p5 }
 0x329   : > { %p2249_p11 = pneg %p2248_p13 }
 0x32b   : > { %p2256_p4 = pnand %p2255_p9, %p2249_p11 }
 0x32d   : > { %2259 = shalt.err (!%p2256_p4)
}
 0x32e   : > { %s2383_s23 = smov 32   ;;  %s2384_s21 = smov 2  }
 0x32f   : > { %1939 = dma.vmem_to_hbm [thread:$0]  (%p1970_p1), %s1475_s0, 160, %s2726_s6, [#allocation6], %s2383_s23, %s2383_s23, %s2384_s21  }
 0x330   : > { %s2385_s26 = smov [#allocation14]  }
 0x331   : > { %s1489_s14 = sshll.u32 %s2385_s26, 4  ;;  %s1490_s14 = int_to_ptr.vmem [resolvable:$true] %s1489_s14 }
 0x332   : > { %s2270_s24 = scalar_lea.vmem %s1490_s14, 160  ;;  %p2277_p10 = scmp.lt.s32.totalorder %s1490_s14, %s1490_s14 }
 0x333   : > { %p2271_p8 = scmp.ne.s32.totalorder %s1490_s14, %s2270_s24  ;;  %p2278_p6 = scmp.lt.s32.totalorder %s2270_s24, %s2270_s24 }
 0x335   : > { %p2272_p12 = pnand %p2271_p8, %p1970_p1  ;;  %p2279_p0 = por %p2278_p6, %p2277_p10 }
 0x337   : > { %p2273_p2 = pneg %p2272_p12 }
 0x339   : > { %p2280_p3 = pnand %p2279_p0, %p2273_p2 }
 0x33b   : > { %2283 = shalt.err (!%p2280_p3)
}
 0x33c   : > { %1941 = dma.vmem_to_hbm [thread:$0]  (%p1970_p1), %s1490_s14, 160, %s2727_s7, [#allocation15], %s2383_s23, %s2383_s23, %s2384_s21  }
 0x33d   : > { %2335 = dma.done.wait (%p1970_p1), [#allocation6], 160  }
 0x33e   : > { %2337 = vsyncadd (%p1970_p1), [#allocation6], 4294967136 }
 0x33f   : > { %2339 = dma.done.wait (%p1970_p1), [#allocation15], 160  }
 0x340   : > { %2341 = vsyncadd (%p1970_p1), [#allocation15], 4294967136 }
 0x341 PF: > { %s27_s29 = sadd.s32 1, %s2364_s29   ;;  %s2754_s10 = sld [smem:[#allocation22_spill]] }
 0x342   : > { %p24_p13 = scmp.ge.s32.totalorder %s27_s29, 6   ;;  %s2755_s26 = sld [smem:[#allocation24_spill]] }
 0x343   : > { %s2756_s22 = sld [smem:[#allocation23_spill]]  ;;  %s2757_s24 = smov %s2348_s25 }
 0x344   : > { %s2759_s27 = smov %s2360_s28 }
 0x345   :  { %26 = sbr.rel (!%p24_p13) target bundleno = 14 (0xe), region = 126 }
 0x347   : > { %s2758_s25 = smov %s2754_s10 }
 0x349   : > { %s2760_s28 = smov %s2756_s22 }
 0x34a   :  { %1509 = vsyncpa [#allocation5], 1 }
 0x34b   :  { %1511 = vsyncpa [#allocation5 + $0x1], 1 }
 0x34c   :  { %1512 = vsyncpa [#allocation8], 1 }
 0x34d   :  { %1514 = vsyncpa [#allocation8 + $0x1], 1 }
 0x34e   :  { %1515 = vsyncpa [#allocation11], 1 }
 0x34f   :  { %1516 = vsyncpa [#allocation6], 1 }
 0x350   :  { %1518 = vsyncpa [#allocation6 + $0x1], 1 }
 0x351   :  { %1519 = vsyncpa [#allocation15], 1 }

</bundles_post_ra>
